<compile_context>
chip_gen: v6e
topology: v6e:2x2x1
jax: 0.10.0
libtpu: 0.0.40
codegen_flags: <defaults>
</compile_context>

<pallas_src>
import math

import jax
import jax.numpy as jnp
from jax.experimental import pallas as pl
from jax.experimental.pallas import tpu as pltpu

INPUT_DIM = 128
OUTPUT_DIM = 128


def dense_kernel(x_ref, w_ref, b_ref, o_ref):
    # x_ref: (tm, K) f32/bf16, w_ref: (K, N) bf16, b_ref: (1, N) f32,
    # o_ref: (tm, N) bf16 (or f32 if requested).
    x = x_ref[...].astype(jnp.bfloat16)          # in-kernel cast (no-op if bf16)
    acc = jnp.dot(x, w_ref[...], preferred_element_type=jnp.float32)
    o_ref[...] = (acc + b_ref[...]).astype(o_ref.dtype)


def _round_up(x, m):
    return pl.cdiv(x, m) * m


def dense_layer(x, w_t, b, *, tm=None, out_dtype=jnp.bfloat16):
    """y = x @ w_t + b.

    x:   (M, K) activations (f32 or bf16; cast to bf16 inside the kernel)
    w_t: (K, N) transposed torch weight (W.T); pre-convert to bf16 once so the
         astype below is a no-op per call.
    b:   (1, N) bias row (added in f32 on the accumulator)
    """
    M, K = x.shape
    K2, N = w_t.shape
    assert K == K2 and b.shape == (1, N)

    # Per-layer constants: no-ops when the caller pre-converted them.
    w_c = w_t.astype(jnp.bfloat16)
    b_f = b.astype(jnp.float32)

    # Row tile: big enough to sit near the HBM roofline (cap 512), sublane
    # aligned, never larger than the (rounded-up) batch, and small enough that
    # M >= 16 yields >= 2 grid programs (both v7x TensorCores get work).
    if tm is None:
        tm = 512
    tm = min(tm, _round_up(M, 8))
    if M >= 16:
        tm = min(tm, max(8, _round_up(pl.cdiv(M, 2), 8)))
    tm = max(tm, 8)
    assert tm % 8 == 0, "row tile must be sublane-aligned (multiple of 8)"

    grid_m = pl.cdiv(M, tm)  # ragged batches: Pallas clips the trailing block

    return pl.pallas_call(
        dense_kernel,
        out_shape=jax.ShapeDtypeStruct((M, N), out_dtype),
        grid_spec=pltpu.PrefetchScalarGridSpec(
            num_scalar_prefetch=0,
            grid=(grid_m,),
            in_specs=[
                pl.BlockSpec((tm, K), lambda i: (i, 0)),   # x row tile
                pl.BlockSpec((K, N), lambda i: (0, 0)),    # full weight, resident
                pl.BlockSpec((1, N), lambda i: (0, 0)),    # bias row
            ],
            out_specs=pl.BlockSpec((tm, N), lambda i: (i, 0)),
        ),
        compiler_params=pltpu.CompilerParams(
            dimension_semantics=("parallel",),   # shards M across TCs on v7x
        ),
    )(x, w_c, b_f)


def init_params(key, input_dim, output_dim):
    # Mirror torch.nn.Linear default init: U(-1/sqrt(in), 1/sqrt(in))
    kw, kb = jax.random.split(key)
    bound = 1.0 / math.sqrt(input_dim)
    w = jax.random.uniform(kw, (output_dim, input_dim), jnp.float32, -bound, bound)
    b = jax.random.uniform(kb, (output_dim,), jnp.float32, -bound, bound)
    return w, b


if __name__ == "__main__":
    key = jax.random.PRNGKey(0)
    kx, kx2, kp = jax.random.split(key, 3)

    w, b = init_params(kp, INPUT_DIM, OUTPUT_DIM)
    # One-time layer-constant prep (hoisted out of the per-call path).
    w_t = jnp.asarray(w.T, dtype=jnp.bfloat16)       # (INPUT_DIM, OUTPUT_DIM)
    b_row = jnp.asarray(b.reshape(1, OUTPUT_DIM), dtype=jnp.float32)

    # Case 1: tiny batch -> single-step grid, full-array blocks, bf16 output.
    batch = 8
    x = jax.random.normal(kx, (batch, INPUT_DIM), jnp.float32)
    y = jax.block_until_ready(dense_layer(x, w_t, b_row))
    y_ref = x @ w.T + b
    assert y.shape == (batch, OUTPUT_DIM)
    assert y.dtype == jnp.bfloat16
    # bf16 operands + bf16 output -> relaxed tolerance vs. the f32 reference.
    assert jnp.allclose(y.astype(jnp.float32), y_ref, atol=3e-2, rtol=3e-2)

    # Case 2: ragged batch -> >=2 grid programs + clipped trailing block
    # (verifies OOB rows of the last tile are never written back), f32 output.
    batch2 = 40
    x2 = jax.random.normal(kx2, (batch2, INPUT_DIM), jnp.float32)
    y2 = jax.block_until_ready(dense_layer(x2, w_t, b_row, out_dtype=jnp.float32))
    y2_ref = x2 @ w.T + b
    assert y2.shape == (batch2, OUTPUT_DIM)
    assert y2.dtype == jnp.float32
    assert jnp.allclose(y2, y2_ref, atol=2e-2, rtol=2e-2)

    print("KERNEL_OK")
</pallas_src>

<mosaic_0001>
module attributes {stable_mosaic.version = 11 : i64} {
  func.func @dense_kernel(%arg0: i32, %arg1: memref<8x128xf32, #tpu.memory_space<vmem>>, %arg2: memref<128x128xbf16, #tpu.memory_space<vmem>>, %arg3: memref<1x128xf32, #tpu.memory_space<vmem>>, %arg4: memref<8x128xbf16, #tpu.memory_space<vmem>>) attributes {dimension_semantics = [#tpu.dimension_semantics<parallel>], iteration_bounds = array<i64: 1>, scalar_prefetch = 0 : i64, scratch_operands = 0 : i64, tpu.core_type = #tpu.core_type<tc>, window_params = [{transform_indices = @transform_0, window_bounds = array<i64: 8, 128>}, {pipeline_mode = #tpu.pipeline_mode<synchronous>, transform_indices = @transform_1, window_bounds = array<i64: 128, 128>}, {pipeline_mode = #tpu.pipeline_mode<synchronous>, transform_indices = @transform_2, window_bounds = array<i64: 1, 128>}, {transform_indices = @transform_3, window_bounds = array<i64: 8, 128>}]} {
    %c0 = arith.constant 0 : index
    %c0_0 = arith.constant 0 : index
    %0 = vector.load %arg1[%c0, %c0_0] : memref<8x128xf32, #tpu.memory_space<vmem>>, vector<8x128xf32>
    %1 = arith.truncf %0 : vector<8x128xf32> to vector<8x128xbf16>
    %c0_1 = arith.constant 0 : index
    %c0_2 = arith.constant 0 : index
    %2 = vector.load %arg2[%c0_1, %c0_2] : memref<128x128xbf16, #tpu.memory_space<vmem>>, vector<128x128xbf16>
    %cst = arith.constant dense<0.000000e+00> : vector<8x128xf32>
    %3 = tpu.matmul %1, %2, %cst {dimension_numbers = #tpu.dot_dimension_numbers<[1], [0], [0], [1], [0, 0, 1, 1], [], []>} : vector<8x128xbf16>, vector<128x128xbf16>, vector<8x128xf32> -> vector<8x128xf32>
    %c0_3 = arith.constant 0 : index
    %c0_4 = arith.constant 0 : index
    %4 = vector.load %arg3[%c0_3, %c0_4] : memref<1x128xf32, #tpu.memory_space<vmem>>, vector<1x128xf32>
    %5 = vector.broadcast %4 : vector<1x128xf32> to vector<8x128xf32>
    %6 = arith.addf %3, %5 : vector<8x128xf32>
    %7 = arith.truncf %6 : vector<8x128xf32> to vector<8x128xbf16>
    %c0_5 = arith.constant 0 : index
    %c0_6 = arith.constant 0 : index
    %8 = vector.load %arg4[%c0_5, %c0_6] : memref<8x128xbf16, #tpu.memory_space<vmem>>, vector<8x128xbf16>
    tpu.vector_store %arg4[%c0_5, %c0_6], %7 {strides = array<i32>} : memref<8x128xbf16, #tpu.memory_space<vmem>>, vector<8x128xbf16>,
    return
  }
  func.func @transform_0(%arg0: i32) -> (i32, i32) {
    %c0_i32 = arith.constant 0 : i32
    %c0_i32_0 = arith.constant 0 : i32
    return %arg0, %c0_i32 : i32, i32
  }
  func.func @transform_1(%arg0: i32) -> (i32, i32) {
    %c0_i32 = arith.constant 0 : i32
    %c0_i32_0 = arith.constant 0 : i32
    %c0_i32_1 = arith.constant 0 : i32
    return %c0_i32, %c0_i32_0 : i32, i32
  }
  func.func @transform_2(%arg0: i32) -> (i32, i32) {
    %c0_i32 = arith.constant 0 : i32
    %c0_i32_0 = arith.constant 0 : i32
    %c0_i32_1 = arith.constant 0 : i32
    return %c0_i32, %c0_i32_0 : i32, i32
  }
  func.func @transform_3(%arg0: i32) -> (i32, i32) {
    %c0_i32 = arith.constant 0 : i32
    %c0_i32_0 = arith.constant 0 : i32
    return %arg0, %c0_i32 : i32, i32
  }
}

</mosaic_0001>

<bundles_post_ra>
// kernel: tpu_custom_call.1
= control target key start
LH: loop header
LB: loop body
LE: loop exit
PB: predicated region body
PF: predicated region fallthrough
CT: control target
= control target key end

     0   :  { %8 = vsyncpa [#allocation3], 0  ;;  %s331_s0 = inlined_call_operand.hbm [shape: f32[8,128], index: 0, kind: input, shape index: {}]   ;;  %s332_s1 = inlined_call_operand.hbm [shape: bf16[128,128], index: 1, kind: input, shape index: {}]   ;;  %s333_s2 = inlined_call_operand.vmem [shape: f32[1,128], index: 2, kind: input, shape index: {}]   ;;  %s334_s3 = inlined_call_operand.hbm [shape: bf16[8,128], index: 3, kind: output, shape index: {}]  }
   0x1   :  { %9 = vsyncpa [#allocation6], 0 }
   0x2   :  { %10 = vsyncpa [#allocation4], 0  ;;  %s292_s12 = smov [#allocation2]   ;;  %s293_s14 = smov [#allocation5]  }
   0x3   :  { %s17_s13 = sshll.u32 %s292_s12, 4  ;;  %s26_s15 = sshll.u32 %s293_s14, 4  ;;  %s18_s13 = int_to_ptr.vmem [resolvable:$true] %s17_s13  ;;  %s27_s15 = int_to_ptr.vmem [resolvable:$true] %s26_s15 }
   0x4   :  { %s234_s16 = scalar_lea.vmem %s18_s13, 128  ;;  %p239_p1 = scmp.lt.s32.totalorder %s18_s13, %s18_s13 }
   0x5   :  { %p235_p0 = scmp.ne.s32.totalorder %s18_s13, %s234_s16  ;;  %p240_p2 = scmp.lt.s32.totalorder %s234_s16, %s234_s16 }
   0x7   :  { %p241_p3 = por %p240_p2, %p239_p1 }
   0x9   :  { %p242_p4 = pnand %p241_p3, %p235_p0 }
   0xb   :  { %245 = shalt.err (!%p242_p4)
}
   0xc   :  { %20 = dma.hbm_to_vmem [thread:$0]  %s331_s0, 128, %s18_s13, [#allocation3]  }
   0xd   :  { %s254_s19 = scalar_lea.vmem %s27_s15, 1024  ;;  %p259_p6 = scmp.lt.s32.totalorder %s27_s15, %s27_s15 }
   0xe   :  { %p255_p5 = scmp.ne.s32.totalorder %s27_s15, %s254_s19  ;;  %p260_p7 = scmp.lt.s32.totalorder %s254_s19, %s254_s19 }
  0x10   :  { %p261_p8 = por %p260_p7, %p259_p6 }
  0x12   :  { %p262_p9 = pnand %p261_p8, %p255_p5 }
  0x14   :  { %265 = shalt.err (!%p262_p9)
}
  0x15   :  { %s294_s20 = smov 64   ;;  %s295_s21 = smov 4  }
  0x16   :  { %32 = dma.hbm_to_vmem [thread:$0]  %s332_s1, 1024, %s27_s15, [#allocation6], %s294_s20, %s294_s20, %s295_s21  }
  0x17   :  { %286 = dma.done.wait [#allocation3], 128  }
  0x18   :  { %287 = vsyncadd [#allocation3], 4294967168 }
  0x19   :  { %288 = dma.done.wait [#allocation6], 1024  }
  0x1a   :  { %289 = vsyncadd [#allocation6], 4294966272  ;;  %v296_v0 = vmov 0.0   ;;  %vm297_vm0 = vmmov 0   ;;  %v218_v1 = vld [vmem:[#allocation5 + $0x38] sm:$0xff]   ;;  %v219_v2 = vld [vmem:[#allocation5 + $0x30] sm:$0xff]  }
  0x1b   :  { %191 = vmatprep.subr.bf16.mxu0 %v296_v0  ;;  %207 = vmatprep.mubr.msk.bf16.mxu0 %vm297_vm0, %v296_v0  ;;  %v220_v3 = vld [vmem:[#allocation5 + $0x28] sm:$0xff]   ;;  %v221_v4 = vld [vmem:[#allocation5 + $0x20] sm:$0xff]   ;;  %v222_v5 = vld [vmem:[#allocation5 + $0x18] sm:$0xff]   ;;  %s298_s24 = smov [#allocation7]  }
  0x1c   :  { %192 = vmatpush3.bf16.msra.mxu0 %v218_v1  ;;  %v223_v6 = vld [vmem:[#allocation5 + $0x10] sm:$0xff]   ;;  %v224_v7 = vld [vmem:[#allocation5 + $0x8] sm:$0xff]   ;;  %v225_v8 = vld [vmem:[#allocation5] sm:$0xff]   ;;  %s163_s25 = sshll.u32 %s298_s24, 4  ;;  %s164_s25 = int_to_ptr.vmem [resolvable:$true] %s163_s25 }
  0x1d   :  { %193 = vmatprep.subr.bf16.mxu0 %v296_v0  ;;  %v42_v9 = vld [vmem:[#allocation2] sm:$0xff]  ;;  %s266_s26 = scalar_lea.vmem %s164_s25, 64  ;;  %p271_p11 = scmp.lt.s32.totalorder %s164_s25, %s164_s25 }
  0x1e   :  { %v43_v10 = vpack.c.bf16 %v42_v9, %v42_v9  ;;  %v173_v11 = vld [vmem:[%s333_s2] ss:$0 sm:$0xff]  ;;  %p267_p10 = scmp.ne.s32.totalorder %s164_s25, %s266_s26  ;;  %p272_p12 = scmp.lt.s32.totalorder %s266_s26, %s266_s26 }
  0x20   :  { %194 = vmatpush3.bf16.msra.mxu0 %v219_v2  ;;  %p273_p13 = por %p272_p12, %p271_p11 }
  0x21   :  { %195 = vmatprep.subr.bf16.mxu0 %v296_v0 }
  0x22   :  { %p274_p0 = pnand %p273_p13, %p267_p10 }
  0x24   :  { %196 = vmatpush3.bf16.msra.mxu0 %v220_v3 }
  0x25   :  { %197 = vmatprep.subr.bf16.mxu0 %v296_v0 }
  0x28   :  { %198 = vmatpush3.bf16.msra.mxu0 %v221_v4 }
  0x29   :  { %199 = vmatprep.subr.bf16.mxu0 %v296_v0 }
  0x2c   :  { %200 = vmatpush3.bf16.msra.mxu0 %v222_v5 }
  0x2d   :  { %201 = vmatprep.subr.bf16.mxu0 %v296_v0 }
  0x30   :  { %202 = vmatpush3.bf16.msra.mxu0 %v223_v6 }
  0x31   :  { %203 = vmatprep.subr.bf16.mxu0 %v296_v0 }
  0x34   :  { %204 = vmatpush3.bf16.msra.mxu0 %v224_v7 }
  0x35   :  { %205 = vmatprep.subr.bf16.mxu0 %v296_v0 }
  0x38   :  { %206 = vmatpush3.bf16.msra.mxu0 %v225_v8 }
  0x3b   :  { %208 = vmatmul.mubr.bf16.vlgmr.msra.gmra.mxu0 %v43_v10 }
  0xfb   :  { %v149_v12 = vpop.f32.mrf.mxu0 }
  0xfc   :  { %v150_v13 = vadd.f32 %v173_v11, %v149_v12 }
  0xfd   :  { %v209_v14 = vpop.f32.mrf.mxu0 }
  0xfe   :  { %v155_v15 = vpack.c.bf16 %v150_v13, %v150_v13 }
  0xff   :  { %v152_v16 = vpop.f32.mrf.mxu0 }
 0x100   :  { %156 = vst [vmem:[#allocation7] sm:$0xf] %v155_v15 }
 0x101   :  { %v210_v17 = vpop.f32.mrf.mxu0 }
 0x102   :  { %277 = shalt.err (!%p274_p0)
}
 0x103   :  { %166 = dma.vmem_to_hbm [thread:$0]  %s164_s25, 64, %s334_s3, [#allocation4]  }
 0x104   :  { %290 = dma.done.wait [#allocation4], 64  }
 0x105   :  { %291 = vsyncadd [#allocation4], 4294967232 }
 0x106   :  { %170 = vsyncpa [#allocation3], 1 }
 0x107   :  { %171 = vsyncpa [#allocation6], 1 }
 0x108   :  { %172 = vsyncpa [#allocation4], 1 }

</bundles_post_ra>
